<compile_context>
chip_gen: v5e
topology: v5e:2x2
jax: 0.10.0
libtpu: 0.0.40
codegen_flags: <defaults>
</compile_context>

<pallas_src>
import numpy as np
import jax
import jax.numpy as jnp
from jax import lax
from jax.experimental import pallas as pl
from jax.experimental.pallas import tpu as pltpu

B = 8          # number of mu nodes
D = 16         # latent_dim
H = 32         # hidden_dim
P = B * B      # number of ordered (i, j) pairs
LANES = 128

# ---- parameter-slab row layout (every block starts at lane 0, 8-row aligned)
R_GCN1_W = 0            # [D,  H ]  rows   0:16
R_GCN2_W = 16           # [H,  H ]  rows  16:48
R_WA     = 48           # [H, 2H ]  rows  48:80   h_i projection  [score | gamma]
R_WB     = 80           # [H, 2H ]  rows  80:112  h_j projection  [score | gamma]
R_EA     = 112          # [P,  B ]  rows 112:176  pair p -> one-hot(i = p // B)
R_EB     = 176          # [P,  B ]  rows 176:240  pair p -> one-hot(j = p %  B)
R_W2     = 240          # [2H,128]  rows 240:304  lane 0 = score head, lanes 1..D = gamma head
R_BIAS   = 304          # 4 bias rows (gcn1_b, gcn2_b, pair_b1, pair_b2-padded)
SLAB_ROWS = 312         # padded to a multiple of 8


# ----------------------------------------------------------------------------
# Fused Pallas kernel (grid-less; everything lives in VMEM)
# ----------------------------------------------------------------------------
def _fused_kernel(a_ref, mu_ref, w_ref, out_ref):
    a = a_ref[...]                                                    # [B, B]

    # --- GCNConv 1 + ReLU:  h = relu(A_norm @ (mu @ W1) + b1)
    t = jnp.dot(mu_ref[...], w_ref[R_GCN1_W:R_GCN1_W + D, 0:H],
                preferred_element_type=jnp.float32)
    h = jnp.maximum(jnp.dot(a, t, preferred_element_type=jnp.float32)
                    + w_ref[R_BIAS:R_BIAS + 1, 0:H], 0.0)             # [B, H]

    # --- GCNConv 2 + ReLU
    t = jnp.dot(h, w_ref[R_GCN2_W:R_GCN2_W + H, 0:H],
                preferred_element_type=jnp.float32)
    h = jnp.maximum(jnp.dot(a, t, preferred_element_type=jnp.float32)
                    + w_ref[R_BIAS + 1:R_BIAS + 2, 0:H], 0.0)         # [B, H]

    # --- Pairwise first layer: i-part / j-part projections, lanes = [score|gamma].
    pa = jnp.dot(h, w_ref[R_WA:R_WA + H, 0:2 * H],
                 preferred_element_type=jnp.float32)                  # [B, 2H]
    pb = jnp.dot(h, w_ref[R_WB:R_WB + H, 0:2 * H],
                 preferred_element_type=jnp.float32)                  # [B, 2H]

    # --- Replicate to all ordered pairs with constant 0/1 matrices on the
    #     (otherwise idle) MXU: row p = pa[p // B] + pb[p % B].
    hid = (jnp.dot(w_ref[R_EA:R_EA + P, 0:B], pa,
                   preferred_element_type=jnp.float32)
           + jnp.dot(w_ref[R_EB:R_EB + P, 0:B], pb,
                     preferred_element_type=jnp.float32))
    hid = jnp.maximum(hid + w_ref[R_BIAS + 2:R_BIAS + 3, 0:2 * H], 0.0)  # [P, 2H]

    # --- Block-diagonal, lane-dense second layer:
    #     lane 0 = pair score, lanes 1..D = pre-tanh gamma, lanes D+1.. = 0.
    raw = jnp.dot(hid, w_ref[R_W2:R_W2 + 2 * H, :],
                  preferred_element_type=jnp.float32)
    raw = raw + w_ref[R_BIAS + 3:R_BIAS + 4, :]                       # [P, 128]

    # Two full-width unmasked row-block stores (no iota/where, no masked vst):
    # rows 0:P -> raw scores, rows P:2P -> tanh'd gammas.
    out_ref[0:P, :] = raw
    out_ref[P:2 * P, :] = jnp.tanh(raw)


def fused_pair_forward(a_norm, mu, slab):
    out = pl.pallas_call(
        _fused_kernel,
        out_shape=jax.ShapeDtypeStruct((2 * P, LANES), jnp.float32),
        in_specs=[pl.BlockSpec(memory_space=pltpu.MemorySpace.VMEM)] * 3,
        out_specs=pl.BlockSpec(memory_space=pltpu.MemorySpace.VMEM),
    )(a_norm, mu, slab)
    scores_all = out[:P, 0].reshape(B, B)
    gamma_all = out[P:, 1:1 + D].reshape(B, B, D)
    return scores_all, gamma_all


# ----------------------------------------------------------------------------
# Plain-JAX glue (all under one jit -> one host->device dispatch)
# ----------------------------------------------------------------------------
def build_norm_adj(edge_index, num_nodes):
    # Dense D^{-1/2} (A + I) D^{-1/2}, matching PyG gcn_norm with self-loops.
    # One-hot matmul instead of scatter-add (TPU scatter lowers to a serial loop).
    src, dst = edge_index[0], edge_index[1]
    oh_src = jax.nn.one_hot(src, num_nodes, dtype=jnp.float32)        # [E, B]
    oh_dst = jax.nn.one_hot(dst, num_nodes, dtype=jnp.float32)        # [E, B]
    A = jnp.dot(oh_dst.T, oh_src)                                     # A[dst, src] += 1
    A = A + jnp.eye(num_nodes, dtype=jnp.float32)
    deg = jnp.sum(A, axis=1)
    dinv = jnp.where(deg > 0, lax.rsqrt(deg), 0.0)
    return dinv[:, None] * A * dinv[None, :]


@jax.jit
def _device_forward(current_edge_index, mu, slab):
    Bn = mu.shape[0]
    a_norm = build_norm_adj(current_edge_index, Bn)
    scores_all, gamma_all = fused_pair_forward(a_norm, mu, slab)
    # Reference computes s_ij only for i < j and mirrors it (zero diagonal).
    upper = jnp.triu(scores_all, 1)
    scores = upper + upper.T
    return scores, gamma_all


def kruskal_mst(scores, num_nodes):
    # Same as the reference (host-side, sequential union-find).
    all_edges = []
    for i in range(num_nodes):
        for j in range(i + 1, num_nodes):
            all_edges.append((i, j, float(scores[i, j])))
    all_edges.sort(key=lambda t: t[2], reverse=True)
    parent_uf = list(range(num_nodes))
    rank_uf = [0] * num_nodes

    def find(u):
        while parent_uf[u] != u:
            parent_uf[u] = parent_uf[parent_uf[u]]
            u = parent_uf[u]
        return u

    def union(u, v):
        ru, rv = find(u), find(v)
        if ru == rv:
            return False
        if rank_uf[ru] < rank_uf[rv]:
            parent_uf[ru] = rv
        elif rank_uf[ru] > rank_uf[rv]:
            parent_uf[rv] = ru
        else:
            parent_uf[rv] = ru
            rank_uf[ru] += 1
        return True

    mst_edges = []
    for i, j, _sc in all_edges:
        if union(i, j):
            mst_edges.append((i, j))
        if len(mst_edges) == num_nodes - 1:
            break
    return mst_edges


def init_params(key):
    ks = jax.random.split(key, 12)
    s = 0.1

    def n(k, shape):
        return np.asarray(jax.random.normal(k, shape, jnp.float32)) * s

    gcn1_w = n(ks[0], (D, H)); gcn1_b = n(ks[1], (1, H))
    gcn2_w = n(ks[2], (H, H)); gcn2_b = n(ks[3], (1, H))
    score_w1 = n(ks[4], (2 * H, H)); score_b1 = n(ks[5], (1, H))
    score_w2 = n(ks[6], (H, 1));     score_b2 = n(ks[7], (1, 1))
    gamma_w1 = n(ks[8], (2 * H, H)); gamma_b1 = n(ks[9], (1, H))
    gamma_w2 = n(ks[10], (H, D));    gamma_b2 = n(ks[11], (1, D))

    # --- Pack everything into ONE lane-dense [SLAB_ROWS, 128] f32 slab.
    slab = np.zeros((SLAB_ROWS, LANES), np.float32)
    slab[R_GCN1_W:R_GCN1_W + D, 0:H] = gcn1_w
    slab[R_GCN2_W:R_GCN2_W + H, 0:H] = gcn2_w
    # h_i / h_j halves of the pairwise first layers, columns = [score | gamma].
    slab[R_WA:R_WA + H, 0:2 * H] = np.concatenate(
        [score_w1[:H], gamma_w1[:H]], axis=1)
    slab[R_WB:R_WB + H, 0:2 * H] = np.concatenate(
        [score_w1[H:], gamma_w1[H:]], axis=1)
    # Constant 0/1 replication matrices: pair p = (i, j) -> i = p//B, j = p%B.
    Ea = np.zeros((P, B), np.float32); Ea[np.arange(P), np.arange(P) // B] = 1.0
    Eb = np.zeros((P, B), np.float32); Eb[np.arange(P), np.arange(P) % B] = 1.0
    slab[R_EA:R_EA + P, 0:B] = Ea
    slab[R_EB:R_EB + P, 0:B] = Eb
    # Block-diagonal second layer, padded to 128 output lanes.
    slab[R_W2:R_W2 + H, 0:1] = score_w2           # score head <- score hidden
    slab[R_W2 + H:R_W2 + 2 * H, 1:1 + D] = gamma_w2   # gamma head <- gamma hidden
    # Biases.
    slab[R_BIAS + 0, 0:H] = gcn1_b[0]
    slab[R_BIAS + 1, 0:H] = gcn2_b[0]
    slab[R_BIAS + 2, 0:2 * H] = np.concatenate([score_b1, gamma_b1], axis=1)[0]
    slab[R_BIAS + 3, 0] = score_b2[0, 0]
    slab[R_BIAS + 3, 1:1 + D] = gamma_b2[0]

    return jnp.asarray(slab)


def pyg_tree_optimizer_forward(current_edge_index, mu, slab):
    Bn = mu.shape[0]
    scores, gamma_all = _device_forward(current_edge_index, mu, slab)

    # Single D2H transfer of both device outputs; everything below is host-side.
    scores_np, gamma_np = jax.device_get((scores, gamma_all))

    # TODO(synk): Kruskal MST (sequential union-find) has no Pallas
    # equivalent; it runs on the host, same as the reference's numpy path.
    mst_edges = kruskal_mst(scores_np, Bn)

    src_new, dst_new = [], []
    for i, j in mst_edges:
        src_new += [i, j]
        dst_new += [j, i]
    if len(src_new) == 0:
        new_edge_index = jnp.zeros((2, 0), dtype=jnp.int32)
    else:
        new_edge_index = jnp.array([src_new, dst_new], dtype=jnp.int32)

    new_gamma_dict = {}
    for i, j in mst_edges:
        g = gamma_np[i, j]            # host slice: no per-edge device dispatch
        new_gamma_dict[(i, j)] = g
        new_gamma_dict[(j, i)] = g.copy()
    return new_edge_index, new_gamma_dict


# ----------------------------------------------------------------------------
if __name__ == "__main__":
    key = jax.random.PRNGKey(0)
    k_mu, k_p = jax.random.split(key)

    mu = jax.random.normal(k_mu, (B, D), jnp.float32)
    # Bidirectional path graph 0-1-2-...-(B-1) as the current tree.
    src = list(range(B - 1)) + list(range(1, B))
    dst = list(range(1, B)) + list(range(B - 1))
    current_edge_index = jnp.array([src, dst], dtype=jnp.int32)

    slab = init_params(k_p)

    new_edge_index, new_gamma_dict = pyg_tree_optimizer_forward(
        current_edge_index, mu, slab)
    jax.block_until_ready(new_edge_index)

    assert new_edge_index.shape == (2, 2 * (B - 1)), new_edge_index.shape
    assert len(new_gamma_dict) == 2 * (B - 1)
    for v in new_gamma_dict.values():
        assert v.shape == (D,)

    print("KERNEL_OK")
</pallas_src>

<mosaic_0001>
module attributes {stable_mosaic.version = 11 : i64} {
  func.func @_fused_kernel(%arg0: memref<8x8xf32, #tpu.memory_space<vmem>>, %arg1: memref<8x16xf32, #tpu.memory_space<vmem>>, %arg2: memref<312x128xf32, #tpu.memory_space<vmem>>, %arg3: memref<128x128xf32, #tpu.memory_space<vmem>>) attributes {dimension_semantics = [], scalar_prefetch = 0 : i64, scratch_operands = 0 : i64, tpu.core_type = #tpu.core_type<tc>} {
    %c0 = arith.constant 0 : index
    %c0_0 = arith.constant 0 : index
    %0 = vector.load %arg0[%c0, %c0_0] : memref<8x8xf32, #tpu.memory_space<vmem>>, vector<8x8xf32>
    %c0_1 = arith.constant 0 : index
    %c0_2 = arith.constant 0 : index
    %1 = vector.load %arg1[%c0_1, %c0_2] : memref<8x16xf32, #tpu.memory_space<vmem>>, vector<8x16xf32>
    %c0_3 = arith.constant 0 : index
    %c0_4 = arith.constant 0 : index
    %2 = vector.load %arg2[%c0_3, %c0_4] : memref<312x128xf32, #tpu.memory_space<vmem>>, vector<16x32xf32>
    %cst = arith.constant dense<0.000000e+00> : vector<8x32xf32>
    %3 = tpu.matmul %1, %2, %cst {dimension_numbers = #tpu.dot_dimension_numbers<[1], [0], [0], [1], [0, 0, 1, 1], [], []>} : vector<8x16xf32>, vector<16x32xf32>, vector<8x32xf32> -> vector<8x32xf32>
    %cst_5 = arith.constant dense<0.000000e+00> : vector<8x32xf32>
    %4 = tpu.matmul %0, %3, %cst_5 {dimension_numbers = #tpu.dot_dimension_numbers<[1], [0], [0], [1], [0, 0, 1, 1], [], []>} : vector<8x8xf32>, vector<8x32xf32>, vector<8x32xf32> -> vector<8x32xf32>
    %c304 = arith.constant 304 : index
    %c0_6 = arith.constant 0 : index
    %5 = vector.load %arg2[%c304, %c0_6] : memref<312x128xf32, #tpu.memory_space<vmem>>, vector<1x32xf32>
    %6 = vector.broadcast %5 : vector<1x32xf32> to vector<8x32xf32>
    %7 = arith.addf %4, %6 : vector<8x32xf32>
    %cst_7 = arith.constant 0.000000e+00 : f32
    %8 = vector.broadcast %cst_7 : f32 to vector<8x32xf32>
    %9 = arith.maximumf %7, %8 : vector<8x32xf32>
    %c16 = arith.constant 16 : index
    %c0_8 = arith.constant 0 : index
    %10 = vector.load %arg2[%c16, %c0_8] : memref<312x128xf32, #tpu.memory_space<vmem>>, vector<32x32xf32>
    %cst_9 = arith.constant dense<0.000000e+00> : vector<8x32xf32>
    %11 = tpu.matmul %9, %10, %cst_9 {dimension_numbers = #tpu.dot_dimension_numbers<[1], [0], [0], [1], [0, 0, 1, 1], [], []>} : vector<8x32xf32>, vector<32x32xf32>, vector<8x32xf32> -> vector<8x32xf32>
    %cst_10 = arith.constant dense<0.000000e+00> : vector<8x32xf32>
    %12 = tpu.matmul %0, %11, %cst_10 {dimension_numbers = #tpu.dot_dimension_numbers<[1], [0], [0], [1], [0, 0, 1, 1], [], []>} : vector<8x8xf32>, vector<8x32xf32>, vector<8x32xf32> -> vector<8x32xf32>
    %c305 = arith.constant 305 : index
    %c0_11 = arith.constant 0 : index
    %13 = vector.load %arg2[%c305, %c0_11] : memref<312x128xf32, #tpu.memory_space<vmem>>, vector<1x32xf32>
    %14 = vector.broadcast %13 : vector<1x32xf32> to vector<8x32xf32>
    %15 = arith.addf %12, %14 : vector<8x32xf32>
    %cst_12 = arith.constant 0.000000e+00 : f32
    %16 = vector.broadcast %cst_12 : f32 to vector<8x32xf32>
    %17 = arith.maximumf %15, %16 : vector<8x32xf32>
    %c48 = arith.constant 48 : index
    %c0_13 = arith.constant 0 : index
    %18 = vector.load %arg2[%c48, %c0_13] : memref<312x128xf32, #tpu.memory_space<vmem>>, vector<32x64xf32>
    %cst_14 = arith.constant dense<0.000000e+00> : vector<8x64xf32>
    %19 = tpu.matmul %17, %18, %cst_14 {dimension_numbers = #tpu.dot_dimension_numbers<[1], [0], [0], [1], [0, 0, 1, 1], [], []>} : vector<8x32xf32>, vector<32x64xf32>, vector<8x64xf32> -> vector<8x64xf32>
    %c80 = arith.constant 80 : index
    %c0_15 = arith.constant 0 : index
    %20 = vector.load %arg2[%c80, %c0_15] : memref<312x128xf32, #tpu.memory_space<vmem>>, vector<32x64xf32>
    %cst_16 = arith.constant dense<0.000000e+00> : vector<8x64xf32>
    %21 = tpu.matmul %17, %20, %cst_16 {dimension_numbers = #tpu.dot_dimension_numbers<[1], [0], [0], [1], [0, 0, 1, 1], [], []>} : vector<8x32xf32>, vector<32x64xf32>, vector<8x64xf32> -> vector<8x64xf32>
    %c112 = arith.constant 112 : index
    %c0_17 = arith.constant 0 : index
    %22 = vector.load %arg2[%c112, %c0_17] : memref<312x128xf32, #tpu.memory_space<vmem>>, vector<64x8xf32>
    %cst_18 = arith.constant dense<0.000000e+00> : vector<64x64xf32>
    %23 = tpu.matmul %22, %19, %cst_18 {dimension_numbers = #tpu.dot_dimension_numbers<[1], [0], [0], [1], [0, 0, 1, 1], [], []>} : vector<64x8xf32>, vector<8x64xf32>, vector<64x64xf32> -> vector<64x64xf32>
    %c176 = arith.constant 176 : index
    %c0_19 = arith.constant 0 : index
    %24 = vector.load %arg2[%c176, %c0_19] : memref<312x128xf32, #tpu.memory_space<vmem>>, vector<64x8xf32>
    %cst_20 = arith.constant dense<0.000000e+00> : vector<64x64xf32>
    %25 = tpu.matmul %24, %21, %cst_20 {dimension_numbers = #tpu.dot_dimension_numbers<[1], [0], [0], [1], [0, 0, 1, 1], [], []>} : vector<64x8xf32>, vector<8x64xf32>, vector<64x64xf32> -> vector<64x64xf32>
    %26 = arith.addf %23, %25 : vector<64x64xf32>
    %c306 = arith.constant 306 : index
    %c0_21 = arith.constant 0 : index
    %27 = vector.load %arg2[%c306, %c0_21] : memref<312x128xf32, #tpu.memory_space<vmem>>, vector<1x64xf32>
    %28 = vector.broadcast %27 : vector<1x64xf32> to vector<64x64xf32>
    %29 = arith.addf %26, %28 : vector<64x64xf32>
    %cst_22 = arith.constant 0.000000e+00 : f32
    %30 = vector.broadcast %cst_22 : f32 to vector<64x64xf32>
    %31 = arith.maximumf %29, %30 : vector<64x64xf32>
    %c240 = arith.constant 240 : index
    %c0_23 = arith.constant 0 : index
    %32 = vector.load %arg2[%c240, %c0_23] : memref<312x128xf32, #tpu.memory_space<vmem>>, vector<64x128xf32>
    %cst_24 = arith.constant dense<0.000000e+00> : vector<64x128xf32>
    %33 = tpu.matmul %31, %32, %cst_24 {dimension_numbers = #tpu.dot_dimension_numbers<[1], [0], [0], [1], [0, 0, 1, 1], [], []>} : vector<64x64xf32>, vector<64x128xf32>, vector<64x128xf32> -> vector<64x128xf32>
    %c307 = arith.constant 307 : index
    %c0_25 = arith.constant 0 : index
    %34 = vector.load %arg2[%c307, %c0_25] : memref<312x128xf32, #tpu.memory_space<vmem>>, vector<1x128xf32>
    %35 = vector.broadcast %34 : vector<1x128xf32> to vector<64x128xf32>
    %36 = arith.addf %33, %35 : vector<64x128xf32>
    %c0_26 = arith.constant 0 : index
    %c0_27 = arith.constant 0 : index
    %37 = vector.load %arg3[%c0_26, %c0_27] : memref<128x128xf32, #tpu.memory_space<vmem>>, vector<64x128xf32>
    tpu.vector_store %arg3[%c0_26, %c0_27], %36 {strides = array<i32>} : memref<128x128xf32, #tpu.memory_space<vmem>>, vector<64x128xf32>,
    %38 = math.tanh %36 : vector<64x128xf32>
    %c64 = arith.constant 64 : index
    %c0_28 = arith.constant 0 : index
    %39 = vector.load %arg3[%c64, %c0_28] : memref<128x128xf32, #tpu.memory_space<vmem>>, vector<64x128xf32>
    tpu.vector_store %arg3[%c64, %c0_28], %38 {strides = array<i32>} : memref<128x128xf32, #tpu.memory_space<vmem>>, vector<64x128xf32>,
    return
  }
}

</mosaic_0001>

<bundles_post_ra>
// kernel: squeeze.5
= control target key start
LH: loop header
LB: loop body
LE: loop exit
PB: predicated region body
PF: predicated region fallthrough
CT: control target
= control target key end

     0   :  { %s66_s8 = smov 104   ;;  %s67_s9 = smov 88   ;;  %vm7_vm0 = vcmask 64512   ;;  %s117_s0 = inlined_call_operand.vmem [shape: f32[64], index: 0, kind: input, shape index: {}]   ;;  %s118_s1 = inlined_call_operand.vmem [shape: f32[8,8], index: 1, kind: output, shape index: {}]  }
   0x1   :  { %v4_v0 = vld [vmem:[%s117_s0] sm:$0x1]  ;;  %s65_s0 = smov 120   ;;  %s68_s10 = smov 112  }
   0x2   :  { %5 = vst [vmem:[#allocation0] sm:$0x1] %v4_v0  ;;  %s69_s11 = smov 96   ;;  %s70_s12 = smov 80  }
   0x3   :  { %s71_s13 = smov 72  }
   0x9   :  { %v9_v1 = vld [vmem:[#allocation0] sm:$0x1]  }
   0xa   :  { %v21_v2 = vld [vmem:[#allocation0] sm:$0x1]   ;;  %10 = vrot.lane.b32.xlu0 %v9_v1, %s65_s0 }
   0xb   :  { %22 = vrot.lane.b32.xlu1 %v21_v2, %s66_s8  ;;  %v33_v3 = vld [vmem:[#allocation0] sm:$0x1]  }
   0xc   :  { %34 = vrot.lane.b32.xlu2 %v33_v3, %s67_s9  ;;  %v15_v4 = vld [vmem:[#allocation0] sm:$0x1]  }
   0xd   :  { %v27_v5 = vld [vmem:[#allocation0] sm:$0x1]  }
   0xe   :  { %v39_v6 = vld [vmem:[#allocation0] sm:$0x1]  }
   0xf   :  { %v45_v7 = vld [vmem:[#allocation0] sm:$0x1]  }
  0x10   :  { %v6_v8 = vld [vmem:[#allocation0] sm:$0x1]  }
  0x11   :  { %8 = vst.msk [vmem:[%s118_s1] sm:$0x1] %vm7_vm0, %v6_v8  }
  0x12   :  { %16 = vrot.lane.b32.xlu0 %v15_v4, %s68_s10 }
  0x13   :  { %28 = vrot.lane.b32.xlu1 %v27_v5, %s69_s11 }
  0x14   :  { %40 = vrot.lane.b32.xlu2 %v39_v6, %s70_s12 }
  0x1a   :  { %46 = vrot.lane.b32.xlu0 %v45_v7, %s71_s13 }
  0x66   :  { %v35_v9 = vpop.permute.xlu2 %34  }
  0x67   :  { %55 = vst.msk [vmem:[%s118_s1 + $0x5] sm:$0x1] %vm7_vm0, %v35_v9  }
  0x6e   :  { %v41_v10 = vpop.permute.xlu2 %40  }
  0x6f   :  { %56 = vst.msk [vmem:[%s118_s1 + $0x6] sm:$0x1] %vm7_vm0, %v41_v10  }
  0x7c   :  { %v11_v11 = vpop.permute.xlu0 %10  }
  0x7d   :  { %v23_v12 = vpop.permute.xlu1 %22   ;;  %51 = vst.msk [vmem:[%s118_s1 + $0x1] sm:$0x1] %vm7_vm0, %v11_v11  }
  0x7e   :  { %53 = vst.msk [vmem:[%s118_s1 + $0x3] sm:$0x1] %vm7_vm0, %v23_v12  }
  0x84   :  { %v17_v13 = vpop.permute.xlu0 %16  }
  0x85   :  { %v29_v14 = vpop.permute.xlu1 %28   ;;  %52 = vst.msk [vmem:[%s118_s1 + $0x2] sm:$0x1] %vm7_vm0, %v17_v13  }
  0x86   :  { %54 = vst.msk [vmem:[%s118_s1 + $0x4] sm:$0x1] %vm7_vm0, %v29_v14  }
  0x8c   :  { %v47_v15 = vpop.permute.xlu0 %46  }
  0x8d   :  { %57 = vst.msk [vmem:[%s118_s1 + $0x7] sm:$0x1] %vm7_vm0, %v47_v15  }

// kernel: _device_forward.1
= control target key start
LH: loop header
LB: loop body
LE: loop exit
PB: predicated region body
PF: predicated region fallthrough
CT: control target
= control target key end

     0   :  { %8 = vsyncpa [#allocation3], 0  ;;  %s543_s15 = smov [#allocation2]   ;;  %s544_s17 = smov 128   ;;  %s652_s0 = inlined_call_operand.vmem [shape: f32[8,8], index: 0, kind: input, shape index: {}]   ;;  %s653_s1 = inlined_call_operand.vmem [shape: f32[8,16], index: 1, kind: input, shape index: {}]   ;;  %s654_s2 = inlined_call_operand.hbm [shape: f32[312,128], index: 2, kind: input, shape index: {}]   ;;  %s655_s3 = inlined_call_operand.vmem [shape: f32[128,128], index: 3, kind: output, shape index: {}]  }
   0x1   :  { %s17_s14 = sshll.u32 %s654_s2, 4  ;;  %s19_s16 = sshll.u32 %s543_s15, 4  ;;  %s18_s14 = int_to_ptr.hbm [resolvable:$true] %s17_s14  ;;  %s20_s16 = int_to_ptr.vmem [resolvable:$true] %s19_s16 }
   0x2   :  { %s545_s18 = smov 8  }
   0x3   :  { %25 = dma.hbm_to_vmem [thread:$0]  %s18_s14, 4992, %s20_s16, [#allocation3], %s544_s17, %s544_s17, %s545_s18  }
   0x4   :  { %541 = dma.done.wait [#allocation3], 4992  }
   0x5   :  { %542 = vsyncadd [#allocation3], 4294962304  ;;  %v33_v0 = vld [vmem:[#allocation2 + $0x8] sm:$0xff]  ;;  %v32_v1 = vld [vmem:[#allocation2] sm:$0xff]  ;;  %vm34_vm0 = vcmask 130048   ;;  %vm60_vm1 = vcmask 64512  }
   0x6   :  { %v31_v2 = vld [vmem:[%s653_s1] sm:$0xff]  ;;  %52 = vmatpush.msra.mxu3 %v33_v0  ;;  %v88_v3 = vld [vmem:[#allocation2 + $0x28] sm:$0xff]  ;;  %v86_v7 = vld [vmem:[#allocation2 + $0x18] sm:$0xff]  ;;  %vm89_vm2 = vcmask 261120   ;;  %vm361_vm3 = vcmask 523264  }
   0x7   :  { %v30_v4 = vld [vmem:[%s652_s0] sm:$0xff]  ;;  %v85_v8 = vld [vmem:[#allocation2 + $0x10] sm:$0xff]  ;;  %v139_v14 = vld [vmem:[#allocation2 + $0x48] sm:$0xff] }
   0x8   :  { %53 = vmatpush.msra.mxu3 %v32_v1  ;;  %v87_v6 = vld [vmem:[#allocation2 + $0x20] sm:$0xff]  ;;  %v497_v9 = vld [vmem:[#allocation2 + $0x130] ss:$0 sm:$0xff]  ;;  %v137_v16 = vld [vmem:[#allocation2 + $0x38] sm:$0xff] }
   0x9   :  { %456 = vmatmul.msk.f32.vlgmr.msra.gmra.mxu3 %vm34_vm0, %v31_v2  ;;  %v138_v15 = vld [vmem:[#allocation2 + $0x40] sm:$0xff]  ;;  %v136_v17 = vld [vmem:[#allocation2 + $0x30] sm:$0xff]  ;;  %v166_v18 = vld [vmem:[#allocation2 + $0x68] sm:$0xff] }
   0xa   :  { %105 = vmatpush.msrb.mxu3 %v88_v3  ;;  %v165_v19 = vld [vmem:[#allocation2 + $0x60] sm:$0xff]  ;;  %v164_v20 = vld [vmem:[#allocation2 + $0x58] sm:$0xff]  ;;  %v163_v21 = vld [vmem:[#allocation2 + $0x50] sm:$0xff] }
   0xb   :  { %v498_v22 = vld [vmem:[#allocation2 + $0x131] ss:$0 sm:$0xff]  ;;  %v188_v29 = vld [vmem:[#allocation2 + $0x78] sm:$0xff]  ;;  %v189_v32 = vld [vmem:[#allocation2 + $0x80] sm:$0xff] }
   0xc   :  { %106 = vmatpush.msrb.mxu3 %v87_v6  ;;  %v187_v26 = vld [vmem:[#allocation2 + $0x70] sm:$0xff]  ;;  %v196_v31 = vld [vmem:[#allocation2 + $0xb8] sm:$0xff]  ;;  %v197_v33 = vld [vmem:[#allocation2 + $0xc0] sm:$0xff] }
   0xd   :  { %v195_v28 = vld [vmem:[#allocation2 + $0xb0] sm:$0xff]  ;;  %v190_v34 = vld [vmem:[#allocation2 + $0x88] sm:$0xff]  ;;  %v357_v38 = vld [vmem:[#allocation2 + $0x120] sm:$0xff] }
   0xe   :  { %107 = vmatpush.msrb.mxu3 %v86_v7  ;;  %v198_v35 = vld [vmem:[#allocation2 + $0xc8] sm:$0xff]  ;;  %v191_v36 = vld [vmem:[#allocation2 + $0x90] sm:$0xff]  ;;  %v356_v39 = vld [vmem:[#allocation2 + $0x118] sm:$0xff] }
   0xf   :  { %v358_v37 = vld [vmem:[#allocation2 + $0x128] sm:$0xff]  ;;  %v355_v40 = vld [vmem:[#allocation2 + $0x110] sm:$0xff]  ;;  %v192_v42 = vld [vmem:[#allocation2 + $0x98] sm:$0xff] }
  0x10   :  { %108 = vmatpush.msrb.mxu3 %v85_v8  ;;  %v199_v41 = vld [vmem:[#allocation2 + $0xd0] sm:$0xff]  ;;  %v200_v43 = vld [vmem:[#allocation2 + $0xd8] sm:$0xff]  ;;  %v193_v44 = vld [vmem:[#allocation2 + $0xa0] sm:$0xff] }
  0x11   :  { %v201_v45 = vld [vmem:[#allocation2 + $0xe0] sm:$0xff]  ;;  %v194_v46 = vld [vmem:[#allocation2 + $0xa8] sm:$0xff]  ;;  %v352_v50 = vld [vmem:[#allocation2 + $0xf8] sm:$0xff] }
  0x12   :  { %v202_v47 = vld [vmem:[#allocation2 + $0xe8] sm:$0xff]  ;;  %v353_v49 = vld [vmem:[#allocation2 + $0x100] sm:$0xff]  ;;  %v351_v51 = vld [vmem:[#allocation2 + $0xf0] sm:$0xff] }
  0x13   :  { %v354_v48 = vld [vmem:[#allocation2 + $0x108] sm:$0xff]  ;;  %v499_v53 = vld [vmem:[#allocation2 + $0x132] ss:$0 sm:$0xff] }
  0x8c   :  { %v55_v5 = vpop.f32.mrf.mxu3 }
  0x8d   :  { %79 = vmatpush.msra.mxu1 %v55_v5 }
  0x8e   :  { %457 = vmatmul.msk.f32.vlgmr.msra.gmra.mxu1 %vm60_vm1, %v30_v4 }
  0x8f   :  { %394 = vmatpush.msrb.mxu1 %v358_v37 }
  0x91   :  { %395 = vmatpush.msrb.mxu1 %v357_v38 }
  0x93   :  { %396 = vmatpush.msrb.mxu1 %v356_v39 }
  0x95   :  { %397 = vmatpush.msrb.mxu1 %v355_v40 }
  0x97   :  { %398 = vmatpush.msrb.mxu1 %v354_v48 }
  0x99   :  { %399 = vmatpush.msrb.mxu1 %v353_v49 }
  0x9b   :  { %400 = vmatpush.msrb.mxu1 %v352_v50 }
  0x9d   :  { %401 = vmatpush.msrb.mxu1 %v351_v51 }
 0x10b   :  { %v81_v10 = vpop.f32.mrf.mxu1 }
 0x10c   :  { %v82_v11 = vadd.f32 %v497_v9, %v81_v10 }
 0x10e   :  { %v84_v12 = vmax.f32 %v82_v11, 0.0 }
 0x110   :  { %458 = vmatmul.msk.f32.vlgmr.msrb.gmra.mxu3 %vm89_vm2, %v84_v12 }
 0x193   :  { %v110_v13 = vpop.f32.mrf.mxu3 }
 0x194   :  { %130 = vmatpush.msra.mxu3 %v110_v13 }
 0x195   :  { %459 = vmatmul.msk.f32.vlgmr.msra.gmra.mxu3 %vm60_vm1, %v30_v4 }
 0x196   :  { %155 = vmatpush.msrb.mxu3 %v139_v14 }
 0x198   :  { %156 = vmatpush.msrb.mxu3 %v138_v15 }
 0x19a   :  { %157 = vmatpush.msrb.mxu3 %v137_v16 }
 0x19c   :  { %158 = vmatpush.msrb.mxu3 %v136_v17 }
 0x19e   :  { %179 = vmatpush.msra.mxu3 %v166_v18 }
 0x1a0   :  { %180 = vmatpush.msra.mxu3 %v165_v19 }
 0x1a2   :  { %181 = vmatpush.msra.mxu3 %v164_v20 }
 0x1a4   :  { %182 = vmatpush.msra.mxu3 %v163_v21 }
 0x218   :  { %v132_v23 = vpop.f32.mrf.mxu3 }
 0x219   :  { %v133_v24 = vadd.f32 %v498_v22, %v132_v23 }
 0x21b   :  { %v135_v25 = vmax.f32 %v133_v24, 0.0 }
 0x21d   :  { %460 = vmatmul.msk.f32.vlgmr.msrb.gmra.mxu3 %vm89_vm2, %v135_v25 }
 0x21e   :  { %486 = vmatpush.msrb.mxu3 %v358_v37 }
 0x220   :  { %487 = vmatpush.msrb.mxu3 %v357_v38 }
 0x222   :  { %488 = vmatpush.msrb.mxu3 %v356_v39 }
 0x224   :  { %489 = vmatpush.msrb.mxu3 %v355_v40 }
 0x225   :  { %461 = vmatmul.msk.f32.vlgmr.msra.gmra.mxu3 %vm89_vm2, %v135_v25 }
 0x226   :  { %490 = vmatpush.msrb.mxu3 %v354_v48 }
 0x228   :  { %491 = vmatpush.msrb.mxu3 %v353_v49 }
 0x22a   :  { %492 = vmatpush.msrb.mxu3 %v352_v50 }
 0x22c   :  { %493 = vmatpush.msrb.mxu3 %v351_v51 }
 0x2a0   :  { %v160_v27 = vpop.f32.mrf.mxu3 }
 0x2a1   :  { %307 = vmatpush.msra.mxu2 %v160_v27 }
 0x2a2   :  { %470 = vmatmul.msk.f32.vlgmr.msra.gmra.mxu2 %vm60_vm1, %v187_v26 }
 0x2a8   :  { %v184_v30 = vpop.f32.mrf.mxu3 }
 0x2a9   :  { %242 = vmatpush.msra.mxu0 %v184_v30 }
 0x2aa   :  { %462 = vmatmul.msk.f32.vlgmr.msra.gmra.mxu0 %vm60_vm1, %v195_v28  ;;  %471 = vmatmul.msk.f32.gmra.mxu2 %vm60_vm1, %v188_v29  ;;  %v500_v29 = vld [vmem:[#allocation2 + $0x133] ss:$0 sm:$0xff] }
 0x2b2   :  { %463 = vmatmul.msk.f32.gmra.mxu0 %vm60_vm1, %v196_v31  ;;  %472 = vmatmul.msk.f32.gmra.mxu2 %vm60_vm1, %v189_v32 }
 0x2ba   :  { %464 = vmatmul.msk.f32.gmra.mxu0 %vm60_vm1, %v197_v33  ;;  %473 = vmatmul.msk.f32.gmra.mxu2 %vm60_vm1, %v190_v34 }
 0x2c2   :  { %465 = vmatmul.msk.f32.gmra.mxu0 %vm60_vm1, %v198_v35  ;;  %474 = vmatmul.msk.f32.gmra.mxu2 %vm60_vm1, %v191_v36 }
 0x2ca   :  { %466 = vmatmul.msk.f32.gmra.mxu0 %vm60_vm1, %v199_v41  ;;  %475 = vmatmul.msk.f32.gmra.mxu2 %vm60_vm1, %v192_v42 }
 0x2d2   :  { %467 = vmatmul.msk.f32.gmra.mxu0 %vm60_vm1, %v200_v43  ;;  %476 = vmatmul.msk.f32.gmra.mxu2 %vm60_vm1, %v193_v44 }
 0x2da   :  { %468 = vmatmul.msk.f32.gmra.mxu0 %vm60_vm1, %v201_v45  ;;  %477 = vmatmul.msk.f32.gmra.mxu2 %vm60_vm1, %v194_v46 }
 0x2e2   :  { %469 = vmatmul.msk.f32.gmra.mxu0 %vm60_vm1, %v202_v47 }
 0x325   :  { %v309_v52 = vpop.f32.mrf.mxu2 }
 0x327   :  { %v244_v54 = vpop.f32.mrf.mxu0 }
 0x328   :  { %v310_v55 = vadd.f32 %v309_v52, %v244_v54 }
 0x32a   :  { %v335_v56 = vadd.f32 %v499_v53, %v310_v55 }
 0x32c   :  { %v343_v57 = vmax.f32 %v335_v56, 0.0 }
 0x32d   :  { %v312_v58 = vpop.f32.mrf.mxu2 }
 0x32e   :  { %478 = vmatmul.msk.f32.vlgmr.msrb.gmra.mxu1 %vm361_vm3, %v343_v57 }
 0x32f   :  { %v247_v59 = vpop.f32.mrf.mxu0 }
 0x330   :  { %v313_v60 = vadd.f32 %v312_v58, %v247_v59 }
 0x332   :  { %v336_v61 = vadd.f32 %v499_v53, %v313_v60 }
 0x334   :  { %v344_v62 = vmax.f32 %v336_v61, 0.0 }
 0x335   :  { %v315_v63 = vpop.f32.mrf.mxu2 }
 0x336   :  { %479 = vmatmul.msk.f32.gmra.mxu1 %vm361_vm3, %v344_v62 }
 0x337   :  { %v250_v0 = vpop.f32.mrf.mxu0 }
 0x338   :  { %v316_v1 = vadd.f32 %v315_v63, %v250_v0 }
 0x33a   :  { %v337_v2 = vadd.f32 %v499_v53, %v316_v1 }
 0x33c   :  { %v345_v3 = vmax.f32 %v337_v2, 0.0 }
 0x33d   :  { %v318_v4 = vpop.f32.mrf.mxu2 }
 0x33e   :  { %480 = vmatmul.msk.f32.gmra.mxu1 %vm361_vm3, %v345_v3 }
 0x33f   :  { %v253_v5 = vpop.f32.mrf.mxu0 }
 0x340   :  { %v319_v6 = vadd.f32 %v318_v4, %v253_v5 }
 0x342   :  { %v338_v7 = vadd.f32 %v499_v53, %v319_v6 }
 0x344   :  { %v346_v8 = vmax.f32 %v338_v7, 0.0 }
 0x345   :  { %v321_v9 = vpop.f32.mrf.mxu2 }
 0x346   :  { %481 = vmatmul.msk.f32.gmra.mxu1 %vm361_vm3, %v346_v8 }
 0x347   :  { %v256_v10 = vpop.f32.mrf.mxu0 }
 0x348   :  { %v322_v11 = vadd.f32 %v321_v9, %v256_v10 }
 0x34a   :  { %v339_v12 = vadd.f32 %v499_v53, %v322_v11 }
 0x34c   :  { %v347_v13 = vmax.f32 %v339_v12, 0.0 }
 0x34d   :  { %v324_v14 = vpop.f32.mrf.mxu2 }
 0x34e   :  { %482 = vmatmul.msk.f32.gmra.mxu1 %vm361_vm3, %v347_v13 }
 0x34f   :  { %v259_v15 = vpop.f32.mrf.mxu0 }
 0x350   :  { %v325_v16 = vadd.f32 %v324_v14, %v259_v15 }
 0x352   :  { %v340_v17 = vadd.f32 %v499_v53, %v325_v16 }
 0x354   :  { %v348_v18 = vmax.f32 %v340_v17, 0.0 }
 0x355   :  { %v327_v19 = vpop.f32.mrf.mxu2 }
 0x356   :  { %483 = vmatmul.msk.f32.gmra.mxu1 %vm361_vm3, %v348_v18 }
 0x357   :  { %v262_v20 = vpop.f32.mrf.mxu0 }
 0x358   :  { %v328_v21 = vadd.f32 %v327_v19, %v262_v20 }
 0x35a   :  { %v341_v22 = vadd.f32 %v499_v53, %v328_v21 }
 0x35c   :  { %v349_v23 = vmax.f32 %v341_v22, 0.0 }
 0x35d   :  { %v330_v24 = vpop.f32.mrf.mxu2 }
 0x35e   :  { %484 = vmatmul.msk.f32.vlgmr.msrb.gmra.mxu3 %vm361_vm3, %v349_v23 }
 0x35f   :  { %v265_v25 = vpop.f32.mrf.mxu0 }
 0x360   :  { %v331_v26 = vadd.f32 %v330_v24, %v265_v25 }
 0x362   :  { %v342_v27 = vadd.f32 %v499_v53, %v331_v26 }
 0x364   :  { %v350_v28 = vmax.f32 %v342_v27, 0.0 }
 0x366   :  { %485 = vmatmul.msk.f32.gmra.mxu3 %vm361_vm3, %v350_v28 }
 0x3ab   :  { %v403_v30 = vpop.f32.mrf.mxu1 }
 0x3ac   :  { %v404_v31 = vadd.f32 %v500_v29, %v403_v30 }
 0x3ae   :  { %427 = vst [vmem:[%s655_s3] sm:$0xff] %v404_v31  ;;  %501 = vtanh.f32 %v404_v31 }
 0x3b3   :  { %v406_v32 = vpop.f32.mrf.mxu1 }
 0x3b4   :  { %v502_v33 = vpop.eup %501  ;;  %v407_v34 = vadd.f32 %v500_v29, %v406_v32 }
 0x3b5   :  { %443 = vst [vmem:[%s655_s3 + $0x40] sm:$0xff] %v502_v33 }
 0x3b6   :  { %428 = vst [vmem:[%s655_s3 + $0x8] sm:$0xff] %v407_v34  ;;  %503 = vtanh.f32 %v407_v34 }
 0x3bb   :  { %v409_v35 = vpop.f32.mrf.mxu1 }
 0x3bc   :  { %v504_v36 = vpop.eup %503  ;;  %v410_v37 = vadd.f32 %v500_v29, %v409_v35 }
 0x3bd   :  { %444 = vst [vmem:[%s655_s3 + $0x48] sm:$0xff] %v504_v36 }
 0x3be   :  { %429 = vst [vmem:[%s655_s3 + $0x10] sm:$0xff] %v410_v37  ;;  %505 = vtanh.f32 %v410_v37 }
 0x3c3   :  { %v412_v38 = vpop.f32.mrf.mxu1 }
 0x3c4   :  { %v506_v39 = vpop.eup %505  ;;  %v413_v40 = vadd.f32 %v500_v29, %v412_v38 }
 0x3c5   :  { %445 = vst [vmem:[%s655_s3 + $0x50] sm:$0xff] %v506_v39 }
 0x3c6   :  { %430 = vst [vmem:[%s655_s3 + $0x18] sm:$0xff] %v413_v40  ;;  %507 = vtanh.f32 %v413_v40 }
 0x3cb   :  { %v415_v41 = vpop.f32.mrf.mxu1 }
 0x3cc   :  { %v508_v42 = vpop.eup %507  ;;  %v416_v43 = vadd.f32 %v500_v29, %v415_v41 }
 0x3cd   :  { %446 = vst [vmem:[%s655_s3 + $0x58] sm:$0xff] %v508_v42 }
 0x3ce   :  { %431 = vst [vmem:[%s655_s3 + $0x20] sm:$0xff] %v416_v43  ;;  %509 = vtanh.f32 %v416_v43 }
 0x3d3   :  { %v418_v44 = vpop.f32.mrf.mxu1 }
 0x3d4   :  { %v510_v45 = vpop.eup %509  ;;  %v419_v46 = vadd.f32 %v500_v29, %v418_v44 }
 0x3d5   :  { %447 = vst [vmem:[%s655_s3 + $0x60] sm:$0xff] %v510_v45 }
 0x3d6   :  { %432 = vst [vmem:[%s655_s3 + $0x28] sm:$0xff] %v419_v46  ;;  %511 = vtanh.f32 %v419_v46 }
 0x3dc   :  { %v512_v47 = vpop.eup %511 }
 0x3dd   :  { %448 = vst [vmem:[%s655_s3 + $0x68] sm:$0xff] %v512_v47 }
 0x3e1   :  { %v421_v48 = vpop.f32.mrf.mxu3 }
 0x3e2   :  { %v422_v49 = vadd.f32 %v500_v29, %v421_v48 }
 0x3e4   :  { %433 = vst [vmem:[%s655_s3 + $0x30] sm:$0xff] %v422_v49  ;;  %513 = vtanh.f32 %v422_v49 }
 0x3e9   :  { %v424_v50 = vpop.f32.mrf.mxu3 }
 0x3ea   :  { %v514_v51 = vpop.eup %513  ;;  %v425_v52 = vadd.f32 %v500_v29, %v424_v50 }
 0x3eb   :  { %449 = vst [vmem:[%s655_s3 + $0x70] sm:$0xff] %v514_v51 }
 0x3ec   :  { %434 = vst [vmem:[%s655_s3 + $0x38] sm:$0xff] %v425_v52  ;;  %515 = vtanh.f32 %v425_v52 }
 0x3f2   :  { %v516_v53 = vpop.eup %515 }
 0x3f3   :  { %450 = vst [vmem:[%s655_s3 + $0x78] sm:$0xff] %v516_v53 }
 0x3f4   :  { %455 = vsyncpa [#allocation3], 1 }

</bundles_post_ra>
